<compile_context>
chip_gen: v5e
topology: v5e:2x2
jax: 0.10.0
libtpu: 0.0.40
codegen_flags: <defaults>
</compile_context>

<pallas_src>
import functools

import jax
import jax.numpy as jnp
from jax.experimental import pallas as pl
from jax.experimental.pallas import tpu as pltpu

LANES = 128


def _folded_params(bits, alpha_activ, activation_ranges):
    """Fold the per-branch parameters exactly as the kernel consumes them."""
    sw = jax.nn.softmax(alpha_activ.astype(jnp.float32), axis=0)
    levels = jnp.asarray([2.0 ** b - 1.0 for b in bits], dtype=jnp.float32)
    ar = activation_ranges.astype(jnp.float32)
    scale = ar / levels
    inv_scale = levels / ar          # multiply-by-inverse instead of divide in-kernel
    wscale = sw * scale              # softmax weight folded into the rescale
    return ar, inv_scale, wscale


def _mix_quant_kernel(params_ref, x_ref, o_ref, *, n_branches):
    """Elementwise mixed-bit fake-quantization of one (tile_rows, 128) tile.

    params_ref: (3, n_branches) f32 in SMEM -> [range; inv_scale; weight*scale]
    x_ref/o_ref: VMEM tiles.
    """
    # Read all per-branch scalars from SMEM once, before touching the tile.
    ars = [params_ref[0, i] for i in range(n_branches)]
    invs = [params_ref[1, i] for i in range(n_branches)]
    wscs = [params_ref[2, i] for i in range(n_branches)]

    x = x_ref[...].astype(jnp.float32)
    relu = jnp.maximum(x, 0.0)                     # shared half-wave lower clamp
    acc = None
    for i in range(n_branches):                    # static, unrolled (n_branches is tiny)
        clamped = jnp.minimum(relu, ars[i])        # clamp(x, 0, activation_range_i)
        q = jnp.round(clamped * invs[i]) * wscs[i]  # quantize + weighted rescale
        acc = q if acc is None else acc + q
    o_ref[...] = acc.astype(o_ref.dtype)


def mix_quant_activ(x, bits, alpha_activ, activation_ranges, *, tile_rows=1024):
    """Pallas implementation of MixQuantActiv.forward.

    x:                  any-shaped float array (NCHW in the example)
    bits:               static python list/tuple of ints
    alpha_activ:        float array, shape (len(bits),)
    activation_ranges:  float array, shape (len(bits),)
    """
    n_branches = len(bits)
    ar, inv_scale, wscale = _folded_params(bits, alpha_activ, activation_ranges)
    params = jnp.stack([ar, inv_scale, wscale], axis=0)   # (3, n_branches) f32 -> SMEM

    orig_shape = x.shape
    orig_dtype = x.dtype
    n = x.size

    # Lane-dense 2-D view. Avoid the full pad/scatter round-trip: only pad the
    # remainder when the element count is not already a multiple of 128.
    flat = x.reshape(-1)
    rem = n % LANES
    if rem != 0:
        flat = jnp.pad(flat, (0, LANES - rem))
    rows = flat.shape[0] // LANES
    x2d = flat.reshape(rows, LANES)

    # Row-tile choice: full extent for small inputs (always legal), otherwise a
    # multiple of 32 rows (valid min-tile packing for f32/bf16/int8 alike).
    if rows <= tile_rows:
        tr = rows
    else:
        tr = max(32, (tile_rows // 32) * 32)
        tr = min(tr, rows)
    grid = (pl.cdiv(rows, tr),)

    # Only raise the scoped-VMEM limit when huge tiles would exceed v5e's 16 MiB default.
    vmem_need = 4 * tr * LANES * x2d.dtype.itemsize + (2 << 20)
    cp_kwargs = dict(dimension_semantics=("parallel",))
    if vmem_need > (16 << 20):
        cp_kwargs["vmem_limit_bytes"] = int(min(vmem_need, 48 << 20))
    compiler_params = pltpu.CompilerParams(**cp_kwargs)

    kernel = functools.partial(_mix_quant_kernel, n_branches=n_branches)

    out2d = pl.pallas_call(
        kernel,
        out_shape=jax.ShapeDtypeStruct((rows, LANES), orig_dtype),
        grid_spec=pltpu.PrefetchScalarGridSpec(
            num_scalar_prefetch=0,
            grid=grid,
            in_specs=[
                pl.BlockSpec(memory_space=pltpu.MemorySpace.SMEM),   # packed params
                pl.BlockSpec((tr, LANES), lambda i: (i, 0)),         # x tile
            ],
            out_specs=pl.BlockSpec((tr, LANES), lambda i: (i, 0)),
        ),
        compiler_params=compiler_params,
    )(params, x2d)

    if rem != 0:
        return out2d.reshape(-1)[:n].reshape(orig_shape)
    return out2d.reshape(orig_shape)


def mix_quant_activ_ref(x, bits, alpha_activ, activation_ranges):
    """Pure-JAX reference using the same folded parameterization as the kernel."""
    ar, inv_scale, wscale = _folded_params(bits, alpha_activ, activation_ranges)
    xf = x.astype(jnp.float32)
    relu = jnp.maximum(xf, 0.0)
    out = None
    for i in range(len(bits)):
        clamped = jnp.minimum(relu, ar[i])
        q = jnp.round(clamped * inv_scale[i]) * wscale[i]
        out = q if out is None else out + q
    return out.astype(x.dtype)


def mix_quant_activ_ref_torch(x, bits, alpha_activ, activation_ranges):
    """Torch-faithful formulation: divide-then-round, weight applied afterwards."""
    sw = jax.nn.softmax(alpha_activ.astype(jnp.float32), axis=0)
    xf = x.astype(jnp.float32)
    out = jnp.zeros_like(xf)
    for i, b in enumerate(bits):
        arr = activation_ranges[i].astype(jnp.float32)
        sc = arr / (2.0 ** b - 1.0)
        clamped = jnp.clip(xf, 0.0, arr)
        q = jnp.round(clamped / sc) * sc
        out = out + sw[i] * q
    return out.astype(x.dtype)


if __name__ == "__main__":
    # Module construction (deterministic, matches __init__):
    bits = [2, 4, 8]
    alpha_activ = jnp.full((len(bits),), 0.01, dtype=jnp.float32)        # .fill_(0.01)
    activation_ranges = jnp.full((len(bits),), 6.0, dtype=jnp.float32)   # QModule init_range = 6.0

    key = jax.random.PRNGKey(0)
    k0, k1, k2 = jax.random.split(key, 3)

    # Primary example: NCHW activation tensor (size is a multiple of 128 -> no padding copy).
    x = jax.random.normal(k0, (2, 4, 16, 16), dtype=jnp.float32) * 3.0
    out = jax.block_until_ready(mix_quant_activ(x, bits, alpha_activ, activation_ranges))
    assert out.shape == x.shape and out.dtype == x.dtype
    ref = mix_quant_activ_ref(x, bits, alpha_activ, activation_ranges)
    assert jnp.allclose(out, ref, atol=1e-5, rtol=1e-5), "kernel vs folded reference mismatch"

    # Torch-faithful check. The kernel multiplies by a precomputed inverse scale, which can
    # only flip round() at ULP-level ties vs the divide formulation; any such flip is bounded
    # by one weighted quantization step and is vanishingly rare.
    ref_t = mix_quant_activ_ref_torch(x, bits, alpha_activ, activation_ranges)
    levels = jnp.asarray([2.0 ** b - 1.0 for b in bits], dtype=jnp.float32)
    sw = jax.nn.softmax(alpha_activ)
    step = float(jnp.max(sw * activation_ranges / levels))
    err = jnp.abs(out - ref_t)
    assert float(err.max()) <= step + 1e-5, "kernel vs torch-style reference mismatch"
    assert int((err > 1e-4).sum()) <= max(4, x.size // 512), "too many quantization-tie flips"

    # Multi-tile grid path (even division, 4 grid steps of 64 rows).
    x2 = jax.random.normal(k1, (4, 8, 32, 32), dtype=jnp.float32) * 3.0
    out2 = jax.block_until_ready(
        mix_quant_activ(x2, bits, alpha_activ, activation_ranges, tile_rows=64))
    ref2 = mix_quant_activ_ref(x2, bits, alpha_activ, activation_ranges)
    assert jnp.allclose(out2, ref2, atol=1e-5, rtol=1e-5), "multi-tile mismatch"

    # Ragged path (element count not a multiple of 128 -> minimal remainder pad + slice).
    x3 = jax.random.normal(k2, (3, 5, 7, 11), dtype=jnp.float32) * 3.0
    out3 = jax.block_until_ready(mix_quant_activ(x3, bits, alpha_activ, activation_ranges))
    ref3 = mix_quant_activ_ref(x3, bits, alpha_activ, activation_ranges)
    assert out3.shape == x3.shape
    assert jnp.allclose(out3, ref3, atol=1e-5, rtol=1e-5), "ragged-size mismatch"

    # TODO(synk): backward/STE (gradients for alpha_activ / activation_range) is training-only
    # and not part of this forward kernel.
    print("KERNEL_OK")
</pallas_src>

<mosaic_0001>
module attributes {stable_mosaic.version = 11 : i64} {
  func.func @_mix_quant_kernel(%arg0: i32, %arg1: memref<3x3xf32, #tpu.memory_space<smem>>, %arg2: memref<16x128xf32, #tpu.memory_space<vmem>>, %arg3: memref<16x128xf32, #tpu.memory_space<vmem>>) attributes {dimension_semantics = [#tpu.dimension_semantics<parallel>], iteration_bounds = array<i64: 1>, scalar_prefetch = 0 : i64, scratch_operands = 0 : i64, tpu.core_type = #tpu.core_type<tc>, window_params = [{transform_indices = @transform_0, window_bounds = array<i64: 3, 3>}, {transform_indices = @transform_1, window_bounds = array<i64: 16, 128>}, {transform_indices = @transform_2, window_bounds = array<i64: 16, 128>}]} {
    %c0 = arith.constant 0 : index
    %c0_0 = arith.constant 0 : index
    %0 = memref.load %arg1[%c0, %c0_0] : memref<3x3xf32, #tpu.memory_space<smem>>
    %c0_1 = arith.constant 0 : index
    %c1 = arith.constant 1 : index
    %1 = memref.load %arg1[%c0_1, %c1] : memref<3x3xf32, #tpu.memory_space<smem>>
    %c0_2 = arith.constant 0 : index
    %c2 = arith.constant 2 : index
    %2 = memref.load %arg1[%c0_2, %c2] : memref<3x3xf32, #tpu.memory_space<smem>>
    %c1_3 = arith.constant 1 : index
    %c0_4 = arith.constant 0 : index
    %3 = memref.load %arg1[%c1_3, %c0_4] : memref<3x3xf32, #tpu.memory_space<smem>>
    %c1_5 = arith.constant 1 : index
    %c1_6 = arith.constant 1 : index
    %4 = memref.load %arg1[%c1_5, %c1_6] : memref<3x3xf32, #tpu.memory_space<smem>>
    %c1_7 = arith.constant 1 : index
    %c2_8 = arith.constant 2 : index
    %5 = memref.load %arg1[%c1_7, %c2_8] : memref<3x3xf32, #tpu.memory_space<smem>>
    %c2_9 = arith.constant 2 : index
    %c0_10 = arith.constant 0 : index
    %6 = memref.load %arg1[%c2_9, %c0_10] : memref<3x3xf32, #tpu.memory_space<smem>>
    %c2_11 = arith.constant 2 : index
    %c1_12 = arith.constant 1 : index
    %7 = memref.load %arg1[%c2_11, %c1_12] : memref<3x3xf32, #tpu.memory_space<smem>>
    %c2_13 = arith.constant 2 : index
    %c2_14 = arith.constant 2 : index
    %8 = memref.load %arg1[%c2_13, %c2_14] : memref<3x3xf32, #tpu.memory_space<smem>>
    %c0_15 = arith.constant 0 : index
    %c0_16 = arith.constant 0 : index
    %9 = vector.load %arg2[%c0_15, %c0_16] : memref<16x128xf32, #tpu.memory_space<vmem>>, vector<16x128xf32>
    %cst = arith.constant 0.000000e+00 : f32
    %10 = vector.broadcast %cst : f32 to vector<16x128xf32>
    %11 = arith.maximumf %9, %10 : vector<16x128xf32>
    %12 = vector.broadcast %0 : f32 to vector<16x128xf32>
    %13 = arith.minimumf %11, %12 : vector<16x128xf32>
    %14 = vector.broadcast %3 : f32 to vector<16x128xf32>
    %15 = arith.mulf %13, %14 : vector<16x128xf32>
    %16 = math.roundeven %15 : vector<16x128xf32>
    %17 = vector.broadcast %6 : f32 to vector<16x128xf32>
    %18 = arith.mulf %16, %17 : vector<16x128xf32>
    %19 = vector.broadcast %1 : f32 to vector<16x128xf32>
    %20 = arith.minimumf %11, %19 : vector<16x128xf32>
    %21 = vector.broadcast %4 : f32 to vector<16x128xf32>
    %22 = arith.mulf %20, %21 : vector<16x128xf32>
    %23 = math.roundeven %22 : vector<16x128xf32>
    %24 = vector.broadcast %7 : f32 to vector<16x128xf32>
    %25 = arith.mulf %23, %24 : vector<16x128xf32>
    %26 = arith.addf %18, %25 : vector<16x128xf32>
    %27 = vector.broadcast %2 : f32 to vector<16x128xf32>
    %28 = arith.minimumf %11, %27 : vector<16x128xf32>
    %29 = vector.broadcast %5 : f32 to vector<16x128xf32>
    %30 = arith.mulf %28, %29 : vector<16x128xf32>
    %31 = math.roundeven %30 : vector<16x128xf32>
    %32 = vector.broadcast %8 : f32 to vector<16x128xf32>
    %33 = arith.mulf %31, %32 : vector<16x128xf32>
    %34 = arith.addf %26, %33 : vector<16x128xf32>
    %c0_17 = arith.constant 0 : index
    %c0_18 = arith.constant 0 : index
    %35 = vector.load %arg3[%c0_17, %c0_18] : memref<16x128xf32, #tpu.memory_space<vmem>>, vector<16x128xf32>
    tpu.vector_store %arg3[%c0_17, %c0_18], %34 {strides = array<i32>} : memref<16x128xf32, #tpu.memory_space<vmem>>, vector<16x128xf32>,
    return
  }
  func.func @transform_0(%arg0: i32) -> (i32, i32) {
    %c0_i32 = arith.constant 0 : i32
    %c0_i32_0 = arith.constant 0 : i32
    %c0_i32_1 = arith.constant 0 : i32
    return %c0_i32, %c0_i32_0 : i32, i32
  }
  func.func @transform_1(%arg0: i32) -> (i32, i32) {
    %c0_i32 = arith.constant 0 : i32
    %c0_i32_0 = arith.constant 0 : i32
    return %arg0, %c0_i32 : i32, i32
  }
  func.func @transform_2(%arg0: i32) -> (i32, i32) {
    %c0_i32 = arith.constant 0 : i32
    %c0_i32_0 = arith.constant 0 : i32
    return %arg0, %c0_i32 : i32, i32
  }
}

</mosaic_0001>

<bundles_post_ra>
// kernel: tpu_custom_call.1
= control target key start
LH: loop header
LB: loop body
LE: loop exit
PB: predicated region body
PF: predicated region fallthrough
CT: control target
= control target key end

     0   :  { %7 = vsyncpa [#allocation5], 0  ;;  %s311_s0 = inlined_call_operand.hbm [shape: f32[3,3], index: 0, kind: input, shape index: {}]   ;;  %s312_s1 = inlined_call_operand.hbm [shape: f32[16,128], index: 1, kind: input, shape index: {}]   ;;  %s313_s2 = inlined_call_operand.hbm [shape: f32[16,128], index: 2, kind: output, shape index: {}]  }
   0x1   :  { %8 = vsyncpa [#allocation3], 0 }
   0x2   :  { %9 = vsyncpa [#allocation4], 0  ;;  %s15_s11 = sshll.u32 %s311_s0, 4  ;;  %s23_s14 = sshll.u32 %s312_s1, 4  ;;  %s16_s11 = int_to_ptr.hbm [resolvable:$true] %s15_s11  ;;  %s24_s14 = int_to_ptr.hbm [resolvable:$true] %s23_s14 }
   0x3   :  { %s240_s15 = smov [#allocation2]   ;;  %s241_s16 = smov [#allocation6]  }
   0x4   :  { %18 = dma.hbm_to_smem %s16_s11, 64, %s240_s15, [#allocation5]  }
   0x5   :  { %s25_s17 = sshll.u32 %s241_s16, 4  ;;  %s242_s18 = smov 128   ;;  %s26_s17 = int_to_ptr.vmem [resolvable:$true] %s25_s17 }
   0x6   :  { %s243_s19 = smov 8  }
   0x7   :  { %31 = dma.hbm_to_vmem [thread:$0]  %s24_s14, 256, %s26_s17, [#allocation3], %s242_s18, %s242_s18, %s243_s19  }
   0x8   :  { %234 = dma.done.wait [#allocation5], 64  }
   0x9   :  { %235 = vsyncadd [#allocation5], 4294967232 }
   0xa   :  { %236 = dma.done.wait [#allocation3], 256  }
   0xb   :  { %237 = vsyncadd [#allocation3], 4294967040 }
   0xc   :  { %40 = sfence }
   0xd   :  { %s41_s0 = sld [smem:[#allocation2]]  ;;  %v50_v0 = vld [vmem:[#allocation6] sm:$0xff]  ;;  %v51_v1 = vld [vmem:[#allocation6 + $0x8] sm:$0xff]  ;;  %s244_s27 = smov [#allocation7]  }
   0xe   :  { %s113_s1 = sld [smem:[#allocation2 + $0x1]]  ;;  %v52_v2 = vmax.f32 %v50_v0, 0.0  ;;  %v53_v3 = vmax.f32 %v51_v1, 0.0  ;;  %s97_s28 = sshll.u32 %s244_s27, 4  ;;  %s98_s28 = int_to_ptr.vmem [resolvable:$true] %s97_s28 }
   0xf   :  { %s114_s20 = sld [smem:[#allocation2 + $0x2]]  ;;  %s99_s3 = sshll.u32 %s313_s2, 4  ;;  %s100_s3 = int_to_ptr.hbm [resolvable:$true] %s99_s3 }
  0x10   :  { %s115_s21 = sld [smem:[#allocation2 + $0x80]] }
  0x11   :  { %s116_s22 = sld [smem:[#allocation2 + $0x81]] }
  0x12   :  { %s269_s23 = sld [smem:[#allocation2 + $0x82]] }
  0x13   :  { %s271_s24 = sld [smem:[#allocation2 + $0x100]]  ;;  %v54_v4 = vstv %s41_s0 }
  0x14   :  { %s273_s25 = sld [smem:[#allocation2 + $0x101]]  ;;  %v55_v5 = vmin.f32 %v52_v2, %v54_v4  ;;  %v65_v6 = vstv %s113_s1  ;;  %v56_v7 = vmin.f32 %v53_v3, %v54_v4 }
  0x15   :  { %v66_v8 = vmin.f32 %v52_v2, %v65_v6  ;;  %v78_v9 = vstv %s114_s20  ;;  %v67_v10 = vmin.f32 %v53_v3, %v65_v6  ;;  %s277_s26 = sld [smem:[#allocation2 + $0x102]] }
  0x16   :  { %v57_v11 = vstv %s115_s21  ;;  %v79_v14 = vmin.f32 %v52_v2, %v78_v9  ;;  %v80_v21 = vmin.f32 %v53_v3, %v78_v9 }
  0x17   :  { %v58_v12 = vmul.f32 %v57_v11, %v55_v5  ;;  %v68_v13 = vstv %s116_s22  ;;  %v59_v17 = vmul.f32 %v57_v11, %v56_v7 }
  0x18   :  { %v69_v15 = vmul.f32 %v68_v13, %v66_v8  ;;  %v81_v16 = vstv %s269_s23  ;;  %v70_v20 = vmul.f32 %v68_v13, %v67_v10 }
  0x19   :  { %v121_v18 = vand.u32 2147483647, %v58_v12  ;;  %v123_v19 = vcvt.f32.s32 %v58_v12  ;;  %v126_v22 = vand.u32 2147483648, %v58_v12  ;;  %v62_v23 = vstv %s271_s24 }
  0x1a   :  { %v137_v24 = vand.u32 2147483647, %v69_v15  ;;  %v139_v25 = vcvt.f32.s32 %v69_v15  ;;  %v142_v27 = vand.u32 2147483648, %v69_v15  ;;  %v73_v28 = vstv %s273_s25 }
  0x1b   :  { %v124_v26 = vcvt.s32.f32 %v123_v19  ;;  %v82_v29 = vmul.f32 %v81_v16, %v79_v14  ;;  %vm280_vm0 = vcmp.lt.f32.partialorder %v121_v18, 8388608.0  ;;  %v129_v32 = vand.u32 2147483647, %v59_v17 }
  0x1c   :  { %v140_v31 = vcvt.s32.f32 %v139_v25  ;;  %v131_v33 = vcvt.f32.s32 %v59_v17  ;;  %vm284_vm1 = vcmp.lt.f32.partialorder %v137_v24, 8388608.0  ;;  %v134_v41 = vand.u32 2147483648, %v59_v17 }
  0x1d   :  { %v125_v34 = vand.u32 2147483647, %v124_v26  ;;  %v153_v36 = vand.u32 2147483647, %v82_v29  ;;  %v155_v37 = vcvt.f32.s32 %v82_v29  ;;  %v158_v39 = vand.u32 2147483648, %v82_v29 }
  0x1e   :  { %v141_v38 = vand.u32 2147483647, %v140_v31  ;;  %v132_v40 = vcvt.s32.f32 %v131_v33  ;;  %vm292_vm3 = vcmp.lt.f32.partialorder %v129_v32, 8388608.0  ;;  %v145_v48 = vand.u32 2147483647, %v70_v20 }
  0x1f   :  { %v127_v42 = vor.u32 %v126_v22, %v125_v34  ;;  %vm288_vm2 = vcmp.lt.f32.partialorder %v153_v36, 8388608.0  ;;  %v156_v44 = vcvt.s32.f32 %v155_v37  ;;  %v147_v49 = vcvt.f32.s32 %v70_v20 }
  0x20   :  { %v143_v46 = vor.u32 %v142_v27, %v141_v38  ;;  %v133_v47 = vand.u32 2147483647, %v132_v40  ;;  %v150_v52 = vand.u32 2147483648, %v70_v20  ;;  %v83_v53 = vmul.f32 %v81_v16, %v80_v21 }
  0x21   :  { %v128_v50 = vsel %vm280_vm0, %v127_v42, %v58_v12  ;;  %v157_v51 = vand.u32 2147483647, %v156_v44  ;;  %v148_v57 = vcvt.s32.f32 %v147_v49  ;;  %v86_v60 = vstv %s277_s26 }
  0x22   :  { %v63_v54 = vmul.f32 %v128_v50, %v62_v23  ;;  %v144_v55 = vsel %vm284_vm1, %v143_v46, %v69_v15  ;;  %v135_v56 = vor.u32 %v134_v41, %v133_v47  ;;  %v163_v61 = vcvt.f32.s32 %v83_v53 }
  0x23   :  { %v74_v58 = vmul.f32 %v144_v55, %v73_v28  ;;  %v159_v59 = vor.u32 %v158_v39, %v157_v51  ;;  %v149_v63 = vand.u32 2147483647, %v148_v57  ;;  %vm146_vm4 = vcmp.lt.f32.partialorder %v145_v48, 8388608.0 }
  0x24   :  { %v136_v62 = vsel %vm292_vm3, %v135_v56, %v59_v17  ;;  %v161_v2 = vand.u32 2147483647, %v83_v53  ;;  %v164_v5 = vcvt.s32.f32 %v163_v61  ;;  %v166_v6 = vand.u32 2147483648, %v83_v53 }
  0x25   :  { %v76_v0 = vadd.f32 %v74_v58, %v63_v54  ;;  %v160_v1 = vsel %vm288_vm2, %v159_v59, %v82_v29  ;;  %v151_v4 = vor.u32 %v150_v52, %v149_v63  ;;  %v64_v7 = vmul.f32 %v136_v62, %v62_v23 }
  0x26   :  { %v87_v3 = vmul.f32 %v160_v1, %v86_v60  ;;  %v165_v10 = vand.u32 2147483647, %v164_v5  ;;  %vm162_vm5 = vcmp.lt.f32.partialorder %v161_v2, 8388608.0 }
  0x27   :  { %v152_v9 = vsel %vm146_vm4, %v151_v4, %v70_v20 }
  0x28   :  { %v89_v8 = vadd.f32 %v87_v3, %v76_v0  ;;  %v75_v11 = vmul.f32 %v152_v9, %v73_v28  ;;  %v167_v12 = vor.u32 %v166_v6, %v165_v10 }
  0x2a   :  { %91 = vst [vmem:[#allocation7] sm:$0xff] %v89_v8  ;;  %v77_v13 = vadd.f32 %v75_v11, %v64_v7  ;;  %v168_v14 = vsel %vm162_vm5, %v167_v12, %v83_v53 }
  0x2b   :  { %v88_v15 = vmul.f32 %v168_v14, %v86_v60 }
  0x2d   :  { %v90_v16 = vadd.f32 %v88_v15, %v77_v13 }
  0x2f   :  { %92 = vst [vmem:[#allocation7 + $0x8] sm:$0xff] %v90_v16 }
  0x30   :  { %105 = dma.vmem_to_hbm [thread:$0]  %s98_s28, 256, %s100_s3, [#allocation4], %s242_s18, %s242_s18, %s243_s19  }
  0x31   :  { %238 = dma.done.wait [#allocation4], 256  }
  0x32   :  { %239 = vsyncadd [#allocation4], 4294967040 }
  0x33   :  { %110 = vsyncpa [#allocation3], 1 }
  0x34   :  { %111 = vsyncpa [#allocation4], 1 }
  0x35   :  { %112 = vsyncpa [#allocation5], 1 }

</bundles_post_ra>
